<compile_context>
chip_gen: v6e
topology: v6e:2x2x1
jax: 0.10.0
libtpu: 0.0.40
codegen_flags: <defaults>
</compile_context>

<pallas_src>
import functools

import jax
import jax.numpy as jnp
from jax.experimental import pallas as pl
from jax.experimental.pallas import tpu as pltpu


# --------------------------------------------------------------------------
# Kernel 1: batch-invariant LoRA weight merge, one grid step per kernel tap.
#   w_eff[k, i, o] = W[o, i, k] + (alpha/rank) * sum_r A[k, o, r] * B[k, r, i]
# (inputs are pre-transposed in the wrapper to channels-last / rank-inner).
# --------------------------------------------------------------------------
def _merge_weight_kernel(scale, w_ref, b_ref, a_ref, o_ref):
    # w_ref: (1, Cin, Cout)  base weight, tap k, channels-last
    # b_ref: (1, Cin, R)     delta_weight_B[k]^T
    # a_ref: (1, R, Cout)    delta_weight_A[k]^T
    # o_ref: (1, Cin, Cout)  merged weight, tap k
    delta = jnp.dot(b_ref[0], a_ref[0], preferred_element_type=jnp.float32)
    o_ref[0] = (w_ref[0].astype(jnp.float32) + scale * delta).astype(o_ref.dtype)


# --------------------------------------------------------------------------
# Kernel 2: the conv1d itself.  Grid = (N, Lout // Lt).  Per step it computes
# an (Lt, Cout) lane-dense output tile; x (one batch row, full length) and the
# merged weight/bias have constant index maps along the Lout axis, so they
# stay resident in VMEM.
# --------------------------------------------------------------------------
def _conv1d_kernel(compute_dtype, x_ref, w_ref, bias_ref, o_ref):
    # x_ref   : (1, L, Cin)     channels-last input, resident per batch row
    # w_ref   : (kW, Cin, Cout) merged weight, resident
    # bias_ref: (1, Cout)       merged bias, resident
    # o_ref   : (1, Lt, Cout)
    kW = w_ref.shape[0]
    Lt = o_ref.shape[1]
    Cout = o_ref.shape[2]

    l0 = pl.program_id(1) * Lt
    if Lt % 8 == 0:
        l0 = pl.multiple_of(l0, 8)        # sublane-aligned tile start

    acc = jnp.zeros((Lt, Cout), jnp.float32)
    for k in range(kW):                   # kW is small & static: unrolled
        # Shifted window: sublane-offset load (channels on lanes stay aligned).
        xs = x_ref[0, pl.ds(l0 + k, Lt), :]
        acc = acc + jnp.dot(xs.astype(compute_dtype),
                            w_ref[k].astype(compute_dtype),
                            preferred_element_type=jnp.float32)
    o_ref[0] = (acc + bias_ref[...].astype(jnp.float32)).astype(o_ref.dtype)


# --------------------------------------------------------------------------
# Wrapper
# --------------------------------------------------------------------------
def lora_conv1d(x, weight, bias, delta_A, delta_B, delta_bias,
                alpha, rank, beta, adapter_enabled=True,
                *, stride=1, padding=0, dilation=1, groups=1,
                compute_dtype=jnp.float32, l_tile=None):
    """x: (N, Cin, L); weight: (Cout, Cin, kW) (PyTorch layouts). Returns (N, Cout, Lout)."""
    assert (stride, padding, dilation, groups) == (1, 0, 1, 1), \
        "Pallas kernel implements nn.Conv1d defaults only (stride=1, padding=0, dilation=1, groups=1)"
    N, Cin, L = x.shape
    Cout, Cin_w, kW = weight.shape
    assert Cin == Cin_w
    Lout = L - kW + 1
    assert Lout > 0

    # ---- layout plumbing: channels-last so Cout sits on lanes --------------
    x_t = jnp.transpose(x, (0, 2, 1))                 # (N, L, Cin)
    w_t = jnp.transpose(weight, (2, 1, 0))            # (kW, Cin, Cout)

    # ---- batch-invariant merge (done ONCE, not per batch element) ----------
    if adapter_enabled:
        scale = float(alpha) / float(rank)
        a_t = jnp.transpose(delta_A, (0, 2, 1))       # (kW, R, Cout)
        b_t = jnp.transpose(delta_B, (0, 2, 1))       # (kW, Cin, R)
        R = a_t.shape[1]
        w_eff = pl.pallas_call(
            functools.partial(_merge_weight_kernel, scale),
            out_shape=jax.ShapeDtypeStruct((kW, Cin, Cout), w_t.dtype),
            grid_spec=pltpu.PrefetchScalarGridSpec(
                num_scalar_prefetch=0,
                grid=(kW,),
                in_specs=[
                    pl.BlockSpec((1, Cin, Cout), lambda k: (k, 0, 0)),
                    pl.BlockSpec((1, Cin, R), lambda k: (k, 0, 0)),
                    pl.BlockSpec((1, R, Cout), lambda k: (k, 0, 0)),
                ],
                out_specs=pl.BlockSpec((1, Cin, Cout), lambda k: (k, 0, 0)),
            ),
            compiler_params=pltpu.CompilerParams(
                dimension_semantics=("parallel",)),
        )(w_t, b_t, a_t)
        if delta_bias is not None:
            base_b = bias if bias is not None else 0.0
            bias_eff = base_b + float(beta) * delta_bias
        else:
            bias_eff = bias
    else:
        w_eff = w_t
        bias_eff = bias

    if bias_eff is None:
        bias_eff = jnp.zeros((Cout,), x.dtype)
    bias2d = jnp.asarray(bias_eff, jnp.float32).reshape(1, Cout)

    # ---- Lout tiling: prefer multiple-of-8 tiles that divide Lout ----------
    if l_tile is None:
        l_tile = Lout
        for cand in (512, 256, 128):
            if Lout % cand == 0:
                l_tile = cand
                break
    assert Lout % l_tile == 0
    n_lt = Lout // l_tile

    # ---- explicit VMEM budget (scoped default is 16 MiB on v5e / 32 MiB on v7x)
    itemsize = 4
    est = itemsize * (2 * L * Cin            # x (double buffered)
                      + 2 * kW * Cin * Cout  # merged weight
                      + 2 * Cout             # bias
                      + 2 * l_tile * Cout    # output tile
                      + 4 * l_tile * Cout)   # accumulator / temporaries
    vmem_limit = int(min(max(2 * est, 16 * 1024 * 1024), 64 * 1024 * 1024))

    # TODO(synk): for very long L, tile the L axis of x with a kW-1 halo
    # (pl.Element offsets) instead of keeping the full row resident per batch.
    y = pl.pallas_call(
        functools.partial(_conv1d_kernel, compute_dtype),
        out_shape=jax.ShapeDtypeStruct((N, Lout, Cout), x.dtype),
        grid_spec=pltpu.PrefetchScalarGridSpec(
            num_scalar_prefetch=0,
            grid=(N, n_lt),
            in_specs=[
                pl.BlockSpec((1, L, Cin), lambda n, l: (n, 0, 0)),      # x (resident over l)
                pl.BlockSpec((kW, Cin, Cout), lambda n, l: (0, 0, 0)),  # merged W (resident)
                pl.BlockSpec((1, Cout), lambda n, l: (0, 0)),           # merged bias (resident)
            ],
            out_specs=pl.BlockSpec((1, l_tile, Cout), lambda n, l: (n, l, 0)),
        ),
        compiler_params=pltpu.CompilerParams(
            dimension_semantics=("parallel", "parallel"),
            vmem_limit_bytes=vmem_limit),
    )(x_t, w_eff, bias2d)

    return jnp.transpose(y, (0, 2, 1))                 # back to (N, Cout, Lout)


# --------------------------------------------------------------------------
# Pure-JAX references
# --------------------------------------------------------------------------
def _conv1d_ref(x, w, b):
    y = jax.lax.conv_general_dilated(
        x, w, window_strides=(1,), padding='VALID',
        dimension_numbers=('NCH', 'OIH', 'NCH'))
    return y + b[None, :, None]


def reference_forward(x, weight, bias, delta_A, delta_B, delta_bias,
                      alpha, rank, beta, adapter_enabled=True):
    if adapter_enabled:
        w_eff = weight + (alpha / rank) * jnp.einsum('kor,kri->oik',
                                                     delta_A, delta_B)
        b_eff = bias + beta * delta_bias
    else:
        w_eff, b_eff = weight, bias
    return _conv1d_ref(x, w_eff, b_eff)


if __name__ == "__main__":
    key = jax.random.PRNGKey(0)
    k_x, k_w, k_b, k_a, k_bb = jax.random.split(key, 5)

    N, Cin, Cout, L, kW, rank = 2, 4, 8, 16, 3, 2
    alpha, beta = 4.0, 0.5

    x = jax.random.normal(k_x, (N, Cin, L), jnp.float32)
    weight = jax.random.normal(k_w, (Cout, Cin, kW), jnp.float32) * 0.2
    bias = jax.random.normal(k_b, (Cout,), jnp.float32) * 0.1
    bound_a = (6.0 / (Cout * rank)) ** 0.5
    bound_b = (6.0 / (rank * Cin)) ** 0.5
    delta_A = jax.random.uniform(k_a, (kW, Cout, rank), jnp.float32,
                                 -bound_a, bound_a)
    delta_B = jax.random.uniform(k_bb, (kW, rank, Cin), jnp.float32,
                                 -bound_b, bound_b)
    # reset_trainable_parameters zero-inits delta_bias; use nonzero to exercise it
    delta_bias = jax.random.normal(k_b, (Cout,), jnp.float32) * 0.05

    # adapter enabled
    out = lora_conv1d(x, weight, bias, delta_A, delta_B, delta_bias,
                      alpha, rank, beta, adapter_enabled=True)
    out = jax.block_until_ready(out)
    ref = reference_forward(x, weight, bias, delta_A, delta_B, delta_bias,
                            alpha, rank, beta, adapter_enabled=True)
    assert out.shape == (N, Cout, L - kW + 1), out.shape
    assert jnp.allclose(out, ref, atol=1e-4, rtol=1e-4), \
        float(jnp.max(jnp.abs(out - ref)))

    # adapter disabled (base conv only, LoRA path skipped entirely)
    out_d = lora_conv1d(x, weight, bias, delta_A, delta_B, delta_bias,
                        alpha, rank, beta, adapter_enabled=False)
    out_d = jax.block_until_ready(out_d)
    ref_d = reference_forward(x, weight, bias, delta_A, delta_B, delta_bias,
                              alpha, rank, beta, adapter_enabled=False)
    assert jnp.allclose(out_d, ref_d, atol=1e-4, rtol=1e-4), \
        float(jnp.max(jnp.abs(out_d - ref_d)))

    print("KERNEL_OK")
</pallas_src>

<mosaic_0001>
module attributes {stable_mosaic.version = 11 : i64} {
  func.func @_merge_weight_kernel(%arg0: i32, %arg1: memref<1x4x8xf32, #tpu.memory_space<vmem>>, %arg2: memref<1x4x2xf32, #tpu.memory_space<vmem>>, %arg3: memref<1x2x8xf32, #tpu.memory_space<vmem>>, %arg4: memref<1x4x8xf32, #tpu.memory_space<vmem>>) attributes {dimension_semantics = [#tpu.dimension_semantics<parallel>], iteration_bounds = array<i64: 3>, scalar_prefetch = 0 : i64, scratch_operands = 0 : i64, tpu.core_type = #tpu.core_type<tc>, window_params = [{transform_indices = @transform_0, window_bounds = array<i64: 1, 4, 8>}, {transform_indices = @transform_1, window_bounds = array<i64: 1, 4, 2>}, {transform_indices = @transform_2, window_bounds = array<i64: 1, 2, 8>}, {transform_indices = @transform_3, window_bounds = array<i64: 1, 4, 8>}]} {
    %c0 = arith.constant 0 : index
    %c0_0 = arith.constant 0 : index
    %c0_1 = arith.constant 0 : index
    %0 = vector.load %arg2[%c0, %c0_0, %c0_1] : memref<1x4x2xf32, #tpu.memory_space<vmem>>, vector<1x4x2xf32>
    %1 = vector.shape_cast %0 : vector<1x4x2xf32> to vector<4x2xf32>
    %c0_2 = arith.constant 0 : index
    %c0_3 = arith.constant 0 : index
    %c0_4 = arith.constant 0 : index
    %2 = vector.load %arg3[%c0_2, %c0_3, %c0_4] : memref<1x2x8xf32, #tpu.memory_space<vmem>>, vector<1x2x8xf32>
    %3 = vector.shape_cast %2 : vector<1x2x8xf32> to vector<2x8xf32>
    %cst = arith.constant dense<0.000000e+00> : vector<4x8xf32>
    %4 = tpu.matmul %1, %3, %cst {dimension_numbers = #tpu.dot_dimension_numbers<[1], [0], [0], [1], [0, 0, 1, 1], [], []>} : vector<4x2xf32>, vector<2x8xf32>, vector<4x8xf32> -> vector<4x8xf32>
    %c0_5 = arith.constant 0 : index
    %c0_6 = arith.constant 0 : index
    %c0_7 = arith.constant 0 : index
    %5 = vector.load %arg1[%c0_5, %c0_6, %c0_7] : memref<1x4x8xf32, #tpu.memory_space<vmem>>, vector<1x4x8xf32>
    %6 = vector.shape_cast %5 : vector<1x4x8xf32> to vector<4x8xf32>
    %cst_8 = arith.constant 2.000000e+00 : f32
    %7 = vector.broadcast %cst_8 : f32 to vector<4x8xf32>
    %8 = arith.mulf %7, %4 : vector<4x8xf32>
    %9 = arith.addf %6, %8 : vector<4x8xf32>
    %c0_9 = arith.constant 0 : index
    %c0_10 = arith.constant 0 : index
    %c0_11 = arith.constant 0 : index
    %10 = vector.load %arg4[%c0_9, %c0_10, %c0_11] : memref<1x4x8xf32, #tpu.memory_space<vmem>>, vector<1x4x8xf32>
    %11 = vector.shape_cast %10 : vector<1x4x8xf32> to vector<4x8xf32>
    %12 = vector.shape_cast %9 : vector<4x8xf32> to vector<1x4x8xf32>
    tpu.vector_store %arg4[%c0_9, %c0_10, %c0_11], %12 {strides = array<i32>} : memref<1x4x8xf32, #tpu.memory_space<vmem>>, vector<1x4x8xf32>,
    return
  }
  func.func @transform_0(%arg0: i32) -> (i32, i32, i32) {
    %c0_i32 = arith.constant 0 : i32
    %c0_i32_0 = arith.constant 0 : i32
    %c0_i32_1 = arith.constant 0 : i32
    return %arg0, %c0_i32, %c0_i32_0 : i32, i32, i32
  }
  func.func @transform_1(%arg0: i32) -> (i32, i32, i32) {
    %c0_i32 = arith.constant 0 : i32
    %c0_i32_0 = arith.constant 0 : i32
    %c0_i32_1 = arith.constant 0 : i32
    return %arg0, %c0_i32, %c0_i32_0 : i32, i32, i32
  }
  func.func @transform_2(%arg0: i32) -> (i32, i32, i32) {
    %c0_i32 = arith.constant 0 : i32
    %c0_i32_0 = arith.constant 0 : i32
    %c0_i32_1 = arith.constant 0 : i32
    return %arg0, %c0_i32, %c0_i32_0 : i32, i32, i32
  }
  func.func @transform_3(%arg0: i32) -> (i32, i32, i32) {
    %c0_i32 = arith.constant 0 : i32
    %c0_i32_0 = arith.constant 0 : i32
    %c0_i32_1 = arith.constant 0 : i32
    return %arg0, %c0_i32, %c0_i32_0 : i32, i32, i32
  }
}

</mosaic_0001>

<bundles_post_ra>
// kernel: tpu_custom_call.1
= control target key start
LH: loop header
LB: loop body
LE: loop exit
PB: predicated region body
PF: predicated region fallthrough
CT: control target
= control target key end

     0   :  { %8 = vsyncpa [#allocation3], 0  ;;  %s622_s0 = inlined_call_operand.vmem [shape: f32[3,4,8], index: 0, kind: input, shape index: {}]   ;;  %s623_s1 = inlined_call_operand.vmem [shape: f32[3,4,2], index: 1, kind: input, shape index: {}]   ;;  %s624_s2 = inlined_call_operand.vmem [shape: f32[3,2,8], index: 2, kind: input, shape index: {}]   ;;  %s625_s3 = inlined_call_operand.hbm [shape: f32[3,4,8], index: 3, kind: output, shape index: {}]  }
   0x1   :  { %10 = vsyncpa [#allocation3 + $0x1], 0  ;;  %s529_s12 = smov 0   ;;  %s531_s13 = smov 0  }
   0x2   :  { %s533_s14 = smov 0   ;;  %s535_s15 = smov 0  }
   0x3 LB: > { %s550_s16 = sadd.s32 4294967295, %s504_s15   ;;  %s382_s17 = sadd.s32 4294967294, %s504_s15   ;;  %s504_s15 = sphi %s535_s15, %s631_s15   ;;  %s500_s14 = sphi %s533_s14, %s630_s14   ;;  %s496_s13 = sphi %s531_s13, %s629_s13   ;;  %s492_s12 = sphi %s529_s12, %s628_s12  }
   0x4   : > { %s554_s18 = sadd.s32 1, %s504_s15   ;;  %s101_s19 = sadd.s32 1, %s500_s14 }
   0x5   : > { %s98_s20 = ssub.s32 %s504_s15, %s554_s18  ;;  %p111_p0 = scmp.ne.s32.totalorder %s500_s14, %s496_s13 }
   0x6   : > { %p99_p1 = scmp.eq.s32.totalorder %s98_s20, 0  ;;  %p112_p2 = scmp.eq.s32.totalorder %s550_s16, 2 }
   0x7   : > { %p117_p3 = scmp.ne.s32.totalorder %s496_s13, %s492_s12  ;;  %p118_p4 = scmp.eq.s32.totalorder %s382_s17, 2 }
   0x8   : > { %s565_s21 = scalar_select %p99_p1, %s500_s14, %s101_s19  }
   0x9   : > { %p567_p5 = por %p112_p2, %p111_p0  ;;  %p571_p6 = por %p118_p4, %p117_p3 }
   0xa   : > { %p385_p7 = scmp.ge.s32.totalorder %s504_s15, 1  ;;  %p157_p8 = scmp.lt.s32.totalorder %s504_s15, 4 }
   0xc   : > { %p158_p9 = pnand %p385_p7, %p157_p8 }
   0xd   : > { %p188_p10 = scmp.lt.s32.totalorder (!%p158_p9), %s550_s16, 2  ;;  %s185_s6 = sand.u32 (!%p158_p9), 1, %s496_s13  }
   0xe   : > { %161 = sbr.rel (%p158_p9) target bundleno = 235 (0xeb), region = 32  ;;  %s386_s7 = sshll.u32 (!%p158_p9), %s185_s6, 2 }
   0xf   : > { %s393_s11 = sshll.u32 (!%p158_p9), %s550_s16, 6  ;;  %s187_s17 = scalar_lea.vmem (!%p158_p9), [#allocation2], %s386_s7 }
  0x10   : > { %s299_s19 = sshll.u32 (!%p158_p9), %s187_s17, 4  ;;  %s286_s27 = scalar_lea.sflag (!%p158_p9), [#allocation3], %s185_s6  ;;  %s300_s19 = int_to_ptr.vmem [resolvable:$true] %s299_s19 }
  0x11   : > { %s444_s28 = scalar_lea.vmem (!%p158_p9), %s300_s19, 64 }
  0x12   : > { %p445_p11 = scmp.ne.s32.totalorder (!%p158_p9), %s300_s19, %s444_s28 }
  0x13   : > { %v506_v0 = vmov 0.0   ;;  %vm507_vm0 = vmmov 0   ;;  %s189_s24 = scalar_select %p188_p10, %s550_s16, 2  ;;  %vm206_vm1 = vcmask 1041408   ;;  %vm202_vm2 = vcmask 15360  }
  0x14   : > { %398 = vmatprep.subr.mxu0 %v506_v0  ;;  %400 = vmatprep.mubr.msk.f32.mxu0 %vm507_vm0, %v506_v0  ;;  %vm283_vm3 = vcmask 60416   ;;  %p446_p12 = pnand %p445_p11, %p567_p5 }
  0x15   : > { %s389_s25 = sshll.u32 %s189_s24, 1  ;;  %s387_s26 = sshll.u32 %s189_s24, 2 }
  0x16   : > { %s199_s29 = scalar_lea.vmem %s624_s2, %s389_s25  ;;  %s195_s5 = scalar_lea.vmem %s623_s1, %s387_s26 }
  0x17   : > { %v201_v1 = vld [vmem:[%s199_s29] sm:$0x3]  ;;  %s191_s10 = scalar_lea.vmem %s622_s0, %s387_s26  ;;  %s297_s25 = scalar_lea.hbm %s625_s3, %s393_s11 }
  0x18   : > { %v200_v2 = vld [vmem:[%s195_s5] sm:$0xf]  ;;  %399 = vmatpush3.msk.msra.mxu0 %vm206_vm1, %v201_v1  ;;  %p447_p13 = pneg %p446_p12  ;;  %s508_s26 = smov [#allocation2]  }
  0x19   : > { %401 = vmatmul.mubr.msk.f32.vlgmr.msra.gmra.mxu0 %vm202_vm2, %v200_v2  ;;  %v280_v4 = vld [vmem:[%s191_s10] sm:$0xf]  ;;  %s448_s16 = sshll.u32 %s508_s26, 4  ;;  %s449_s16 = int_to_ptr.vmem [resolvable:$false] %s448_s16 }
  0x1a   : > { %s450_s29 = scalar_lea.vmem %s449_s16, 128  ;;  %p451_p0 = scmp.lt.s32.totalorder %s300_s19, %s449_s16 }
  0x1b   : > { %p452_p1 = scmp.lt.s32.totalorder %s450_s29, %s444_s28 }
  0x1d   : > { %p453_p2 = por %p452_p1, %p451_p0 }
  0x1f   : > { %p454_p3 = pnand %p453_p2, %p447_p13 }
  0xd9   : > { %v276_v3 = vpop.f32.mrf.mxu0 }
  0xda   : > { %v281_v5 = vmul.f32 2.0, %v276_v3 }
  0xdb   : > { %v402_v6 = vpop.f32.mrf.mxu0 }
  0xdc   : > { %v282_v7 = vadd.f32 %v281_v5, %v280_v4 }
  0xde   : > { %284 = vst.msk [vmem:[%s187_s17] sm:$0xf] %vm283_vm3, %v282_v7 }
  0xdf   : > { %457 = shalt.err (!%p454_p3)
}
  0xe0   : > { %s458_s30 = scalar_lea.hbm %s297_s25, 64  ;;  %s462_s6 = scalar_lea.hbm %s625_s3, 192 }
  0xe1   : > { %p459_p4 = scmp.ne.s32.totalorder %s297_s25, %s458_s30  ;;  %p463_p9 = scmp.lt.s32.totalorder %s297_s25, %s625_s3 }
  0xe2   : > { %p464_p10 = scmp.lt.s32.totalorder %s462_s6, %s458_s30 }
  0xe3   : > { %p460_p7 = pnand %p459_p4, %p567_p5 }
  0xe4   : > { %p465_p11 = por %p464_p10, %p463_p9 }
  0xe5   : > { %p461_p8 = pneg %p460_p7 }
  0xe7   : > { %p466_p12 = pnand %p465_p11, %p461_p8 }
  0xe9   : > { %469 = shalt.err (!%p466_p12)
}
  0xea   : > { %403 = dma.vmem_to_hbm [thread:$0]  (%p567_p5), %s300_s19, 64, %s297_s25, %s286_s27  }
  0xeb PF: > { %p409_p13 = scmp.ge.s32.totalorder %s504_s15, 2  ;;  %s311_s9 = sand.u32 1, %s492_s12  }
  0xec   : > { %s312_s10 = scalar_lea.sflag [#allocation3], %s311_s9 }
  0xed   : > { %p406_p0 = pnand %p409_p13, %p571_p6 }
  0xef   : > { %p407_p1 = pneg %p406_p0 }
  0xf1   : > { %487 = dma.done.wait (%p407_p1), %s312_s10, 64  }
  0xf2   : > { %489 = vsyncadd (%p407_p1), %s312_s10, 4294967232  ;;  %p13_p2 = scmp.ge.s32.totalorder %s554_s18, 5   ;;  %s628_s12 = smov %s496_s13 }
  0xf3   : > { %s629_s13 = smov %s500_s14  ;;  %s630_s14 = smov %s565_s21 }
  0xf4   : > { %s631_s15 = smov %s554_s18  ;;  %15 = sbr.rel (!%p13_p2) target bundleno = 3 (0x3), region = 73 }
  0xf9   :  { %317 = vsyncpa [#allocation3], 1 }
  0xfa   :  { %319 = vsyncpa [#allocation3 + $0x1], 1 }

</bundles_post_ra>
